<compile_context>
chip_gen: v7x
topology: tpu7x:2x2x1
jax: 0.10.0
libtpu: 0.0.40
codegen_flags: <defaults>
</compile_context>

<pallas_src>
import functools

import jax
import jax.numpy as jnp
from jax.experimental import pallas as pl
from jax.experimental.pallas import tpu as pltpu

BN_EPS = 1e-5        # torch BatchNorm1d default eps
NORM_EPS = 1e-12     # torch F.normalize default eps
LANE = 128
VMEM_LIMIT = 32 * 1024 * 1024   # safe on v5e/v6e (128 MiB phys) and v7x (64 MiB phys)


def _round_up(a, m):
    return ((a + m - 1) // m) * m


def _pad2(a, rows, cols):
    r, c = a.shape
    if (r, c) == (rows, cols):
        return a
    return jnp.pad(a, ((0, rows - r), (0, cols - c)))


def _cparams(sem):
    return pltpu.CompilerParams(dimension_semantics=sem, vmem_limit_bytes=VMEM_LIMIT)


# ---------------------------------------------------------------------------
# Shared fused-MLP tile math.  H and O are lane-padded to multiples of 128:
# the zero padding is exact (ReLU(0)=0, zero columns add 0 to the L2 sum).
# ---------------------------------------------------------------------------
def _mlp_tile(x, w1, b1, w2, b2, w3, b3):
    h1 = jnp.maximum(jnp.dot(x, w1, preferred_element_type=jnp.float32) + b1, 0.0)
    h2 = jnp.maximum(jnp.dot(h1, w2, preferred_element_type=jnp.float32) + b2, 0.0)
    y = jnp.dot(h2, w3, preferred_element_type=jnp.float32) + b3
    # F.normalize(y, dim=1): y / max(||y||, eps) == y * rsqrt(max(sum(y^2), eps^2))
    sq = jnp.sum(y * y, axis=1, keepdims=True)
    return y * jax.lax.rsqrt(jnp.maximum(sq, NORM_EPS * NORM_EPS))


# ---------------------------------------------------------------------------
# Fused single-read kernel: whole (padded) x resident in VMEM, grid over row tiles
# ("arbitrary": steps 1.. depend on the scratch stats written at step 0).
# ---------------------------------------------------------------------------
def fused_kernel(x_ref, gamma_ref, beta_ref,
                 w1_ref, b1_ref, w2_ref, b2_ref, w3_ref, b3_ref,
                 o_ref, scale_ref, shift_ref, *, inv_b, tile_rows):
    i = pl.program_id(0)

    @pl.when(i == 0)
    def _():
        x_all = x_ref[...].astype(jnp.float32)            # [b_pad, num_i] (padded rows are 0)
        s = jnp.sum(x_all, axis=0, keepdims=True)
        sq = jnp.sum(x_all * x_all, axis=0, keepdims=True)
        mean = s * inv_b
        var = jnp.maximum(sq * inv_b - mean * mean, 0.0)   # biased batch variance
        scale_ref[...] = gamma_ref[...] * jax.lax.rsqrt(var + BN_EPS)
        shift_ref[...] = beta_ref[...] - mean * scale_ref[...]

    r0 = pl.multiple_of(i * tile_rows, 8)
    x_t = x_ref[pl.ds(r0, tile_rows), :].astype(jnp.float32)
    # TODO(synk): fully folding scale into w1 here would need a [1,num_i]->[num_i,1]
    # in-kernel relayout; keep the cheap per-tile FMA (the full fold is done in the
    # two-pass path's wrapper where it is free).
    x_bn = x_t * scale_ref[...] + shift_ref[...]
    o_ref[...] = _mlp_tile(x_bn, w1_ref[...], b1_ref[...], w2_ref[...],
                           b2_ref[...], w3_ref[...], b3_ref[...]).astype(o_ref.dtype)


# ---------------------------------------------------------------------------
# Two-pass fallback, pass 1: batch sum / sum-of-squares.
# grid = (2, num_tiles//2); leading axis "parallel" so v7x's two TensorCores each
# reduce half the batch tiles into their own (8, num_i) partial slab.
# ---------------------------------------------------------------------------
def bn_stats_kernel(x_ref, sum_ref, sumsq_ref):
    @pl.when(pl.program_id(1) == 0)
    def _():
        sum_ref[...] = jnp.zeros_like(sum_ref)
        sumsq_ref[...] = jnp.zeros_like(sumsq_ref)

    x = x_ref[...].astype(jnp.float32)                     # [tb, num_i] (padded rows are 0)
    sum_ref[...] += jnp.sum(x, axis=0, keepdims=True)      # broadcast into the 8-row slab
    sumsq_ref[...] += jnp.sum(x * x, axis=0, keepdims=True)


# ---------------------------------------------------------------------------
# Two-pass fallback, pass 2: BatchNorm already folded into w1/b1 in the wrapper,
# so x feeds the MXU directly.  Batch-parallel grid.
# ---------------------------------------------------------------------------
def mlp_kernel(x_ref, w1_ref, b1_ref, w2_ref, b2_ref, w3_ref, b3_ref, o_ref):
    x = x_ref[...].astype(jnp.float32)
    o_ref[...] = _mlp_tile(x, w1_ref[...], b1_ref[...], w2_ref[...],
                           b2_ref[...], w3_ref[...], b3_ref[...]).astype(o_ref.dtype)


def mlp_forward(x, gamma, beta, w1, b1, w2, b2, w3, b3, *,
                block_rows=1024, fused_max_rows=4096, force_two_pass=False):
    """x: [B, num_i]; weights stored [in, out]; gamma/beta/biases shaped [1, dim]."""
    B, num_i = x.shape
    num_h = w1.shape[1]
    num_o = w3.shape[1]
    H = _round_up(num_h, LANE)
    O = _round_up(num_o, LANE)
    f32 = jnp.float32

    # Lane-pad the tiny hidden/output dims to 128 (exact math, see _mlp_tile comment).
    w1_p = _pad2(w1.astype(f32), num_i, H)
    b1_p = _pad2(b1.astype(f32).reshape(1, -1), 1, H)
    w2_p = _pad2(w2.astype(f32), H, H)
    b2_p = _pad2(b2.astype(f32).reshape(1, -1), 1, H)
    w3_p = _pad2(w3.astype(f32), H, O)
    b3_p = _pad2(b3.astype(f32).reshape(1, -1), 1, O)
    gamma2 = gamma.astype(f32).reshape(1, num_i)
    beta2 = beta.astype(f32).reshape(1, num_i)

    tb = _round_up(min(block_rows, _round_up(B, 8)), 8)

    # ---------------- fused single-read path ----------------
    use_fused = (not force_two_pass) and _round_up(B, tb) <= fused_max_rows
    if use_fused:
        b_pad = _round_up(B, tb)
        nt = b_pad // tb
        x_p = _pad2(x, b_pad, num_i)
        out = pl.pallas_call(
            functools.partial(fused_kernel, inv_b=1.0 / float(B), tile_rows=tb),
            out_shape=jax.ShapeDtypeStruct((b_pad, O), x.dtype),
            grid=(nt,),
            in_specs=[
                pl.BlockSpec((b_pad, num_i), lambda i: (0, 0)),  # x: whole batch, resident
                pl.BlockSpec((1, num_i), lambda i: (0, 0)),      # gamma
                pl.BlockSpec((1, num_i), lambda i: (0, 0)),      # beta
                pl.BlockSpec((num_i, H), lambda i: (0, 0)),      # w1
                pl.BlockSpec((1, H), lambda i: (0, 0)),          # b1
                pl.BlockSpec((H, H), lambda i: (0, 0)),          # w2
                pl.BlockSpec((1, H), lambda i: (0, 0)),          # b2
                pl.BlockSpec((H, O), lambda i: (0, 0)),          # w3
                pl.BlockSpec((1, O), lambda i: (0, 0)),          # b3
            ],
            out_specs=pl.BlockSpec((tb, O), lambda i: (i, 0)),   # lane-dense output tiles
            scratch_shapes=[pltpu.VMEM((1, num_i), f32),         # BN scale
                            pltpu.VMEM((1, num_i), f32)],        # BN shift
            compiler_params=_cparams(("arbitrary",)),
        )(x_p, gamma2, beta2, w1_p, b1_p, w2_p, b2_p, w3_p, b3_p)
        return out[:B, :num_o]

    # ---------------- two-pass fallback (large batches) ----------------
    b_pad = _round_up(B, 2 * tb)         # even tile count -> stats split over 2 cores
    nt = b_pad // tb
    nt_half = nt // 2
    x_p = _pad2(x, b_pad, num_i)

    sums_p, sumsqs_p = pl.pallas_call(
        bn_stats_kernel,
        out_shape=(jax.ShapeDtypeStruct((16, num_i), f32),
                   jax.ShapeDtypeStruct((16, num_i), f32)),
        grid=(2, nt_half),
        in_specs=[pl.BlockSpec((tb, num_i), lambda c, i: (c * nt_half + i, 0))],
        out_specs=(pl.BlockSpec((8, num_i), lambda c, i: (c, 0)),
                   pl.BlockSpec((8, num_i), lambda c, i: (c, 0))),
        compiler_params=_cparams(("parallel", "arbitrary")),
    )(x_p)
    sums = sums_p[::8].sum(axis=0, keepdims=True)       # combine the two per-core partials
    sumsqs = sumsqs_p[::8].sum(axis=0, keepdims=True)

    inv_b = 1.0 / float(B)
    mean = sums * inv_b
    var = jnp.maximum(sumsqs * inv_b - mean * mean, 0.0)
    scale = gamma2 * jax.lax.rsqrt(var + BN_EPS)
    shift = beta2 - mean * scale
    # Fold BatchNorm completely into the first linear layer (tiny plain-JAX ops):
    # (x*s + t) @ W1 + b1 == x @ (s[:,None]*W1) + (t @ W1 + b1)
    w1_f = w1_p * scale.reshape(num_i, 1)
    b1_f = shift @ w1_p + b1_p

    out = pl.pallas_call(
        mlp_kernel,
        out_shape=jax.ShapeDtypeStruct((b_pad, O), x.dtype),
        grid=(nt,),
        in_specs=[
            pl.BlockSpec((tb, num_i), lambda i: (i, 0)),   # x tile (pipelined)
            pl.BlockSpec((num_i, H), lambda i: (0, 0)),    # folded w1 (resident)
            pl.BlockSpec((1, H), lambda i: (0, 0)),        # folded b1
            pl.BlockSpec((H, H), lambda i: (0, 0)),        # w2
            pl.BlockSpec((1, H), lambda i: (0, 0)),        # b2
            pl.BlockSpec((H, O), lambda i: (0, 0)),        # w3
            pl.BlockSpec((1, O), lambda i: (0, 0)),        # b3
        ],
        out_specs=pl.BlockSpec((tb, O), lambda i: (i, 0)),
        compiler_params=_cparams(("parallel",)),
    )(x_p, w1_f, b1_f, w2_p, b2_p, w3_p, b3_p)
    return out[:B, :num_o]


def _reference(x, gamma, beta, w1, b1, w2, b2, w3, b3):
    mean = jnp.mean(x, axis=0, keepdims=True)
    var = jnp.mean((x - mean) ** 2, axis=0, keepdims=True)
    xh = (x - mean) * jax.lax.rsqrt(var + BN_EPS) * gamma + beta
    h1 = jnp.maximum(xh @ w1 + b1, 0.0)
    h2 = jnp.maximum(h1 @ w2 + b2, 0.0)
    y = h2 @ w3 + b3
    n = jnp.maximum(jnp.linalg.norm(y, axis=1, keepdims=True), NORM_EPS)
    return y / n


if __name__ == "__main__":
    # BatchNorm1d(256) in the module fixes num_i = 256.
    B, num_i, num_h, num_o = 64, 256, 32, 16

    key = jax.random.PRNGKey(0)
    keys = jax.random.split(key, 8)

    x = jax.random.normal(keys[0], (B, num_i), dtype=jnp.float32)
    gamma = jnp.ones((1, num_i), dtype=jnp.float32)
    beta = jnp.zeros((1, num_i), dtype=jnp.float32)

    def linear_init(kw, kb, fan_in, fan_out):
        bound = 1.0 / (fan_in ** 0.5)
        w = jax.random.uniform(kw, (fan_in, fan_out), jnp.float32, -bound, bound)
        b = jax.random.uniform(kb, (1, fan_out), jnp.float32, -bound, bound)
        return w, b

    w1, b1 = linear_init(keys[1], keys[2], num_i, num_h)
    w2, b2 = linear_init(keys[3], keys[4], num_h, num_h)
    w3, b3 = linear_init(keys[5], keys[6], num_h, num_o)

    ref = _reference(x, gamma, beta, w1, b1, w2, b2, w3, b3)

    # Fused single-read path; block_rows=32 forces a 2-step grid so the resident-x +
    # scratch-stats pattern is exercised across tiles. Production callers keep the
    # default block_rows=1024.
    out = mlp_forward(x, gamma, beta, w1, b1, w2, b2, w3, b3, block_rows=32)
    out = jax.block_until_ready(out)
    assert out.shape == (B, num_o)
    row_norms = jnp.linalg.norm(out, axis=1)
    assert bool(jnp.all(jnp.abs(row_norms - 1.0) < 1e-4))
    assert bool(jnp.max(jnp.abs(out - ref)) < 1e-4)

    # Two-pass fallback (large-B path): 2-way-split stats reduction + BN folded into w1/b1.
    out2 = mlp_forward(x, gamma, beta, w1, b1, w2, b2, w3, b3,
                       block_rows=32, force_two_pass=True)
    out2 = jax.block_until_ready(out2)
    assert bool(jnp.max(jnp.abs(out2 - ref)) < 1e-4)

    print("KERNEL_OK")
</pallas_src>

<mosaic_0001>
module attributes {stable_mosaic.version = 11 : i64} {
  func.func @fused_kernel(%arg0: i32, %arg1: memref<64x256xf32, #tpu.memory_space<vmem>>, %arg2: memref<1x256xf32, #tpu.memory_space<vmem>>, %arg3: memref<1x256xf32, #tpu.memory_space<vmem>>, %arg4: memref<256x128xf32, #tpu.memory_space<vmem>>, %arg5: memref<1x128xf32, #tpu.memory_space<vmem>>, %arg6: memref<128x128xf32, #tpu.memory_space<vmem>>, %arg7: memref<1x128xf32, #tpu.memory_space<vmem>>, %arg8: memref<128x128xf32, #tpu.memory_space<vmem>>, %arg9: memref<1x128xf32, #tpu.memory_space<vmem>>, %arg10: memref<32x128xf32, #tpu.memory_space<vmem>>, %arg11: memref<1x256xf32, #tpu.memory_space<vmem>>, %arg12: memref<1x256xf32, #tpu.memory_space<vmem>>) attributes {dimension_semantics = [#tpu.dimension_semantics<arbitrary>], iteration_bounds = array<i64: 2>, scalar_prefetch = 0 : i64, scratch_operands = 2 : i64, tpu.core_type = #tpu.core_type<tc>, window_params = [{pipeline_mode = #tpu.pipeline_mode<synchronous>, transform_indices = @transform_0, window_bounds = array<i64: 64, 256>}, {pipeline_mode = #tpu.pipeline_mode<synchronous>, transform_indices = @transform_1, window_bounds = array<i64: 1, 256>}, {pipeline_mode = #tpu.pipeline_mode<synchronous>, transform_indices = @transform_2, window_bounds = array<i64: 1, 256>}, {pipeline_mode = #tpu.pipeline_mode<synchronous>, transform_indices = @transform_3, window_bounds = array<i64: 256, 128>}, {pipeline_mode = #tpu.pipeline_mode<synchronous>, transform_indices = @transform_4, window_bounds = array<i64: 1, 128>}, {pipeline_mode = #tpu.pipeline_mode<synchronous>, transform_indices = @transform_5, window_bounds = array<i64: 128, 128>}, {pipeline_mode = #tpu.pipeline_mode<synchronous>, transform_indices = @transform_6, window_bounds = array<i64: 1, 128>}, {pipeline_mode = #tpu.pipeline_mode<synchronous>, transform_indices = @transform_7, window_bounds = array<i64: 128, 128>}, {pipeline_mode = #tpu.pipeline_mode<synchronous>, transform_indices = @transform_8, window_bounds = array<i64: 1, 128>}, {transform_indices = @transform_9, window_bounds = array<i64: 32, 128>}]} {
    %c0_i32 = arith.constant 0 : i32
    %0 = arith.cmpi eq, %arg0, %c0_i32 : i32
    %1 = arith.extui %0 : i1 to i32
    %c0_i32_0 = arith.constant 0 : i32
    %2 = arith.cmpi ne, %1, %c0_i32_0 : i32
    scf.if %2 {
      %c0_25 = arith.constant 0 : index
      %c0_26 = arith.constant 0 : index
      %41 = vector.load %arg1[%c0_25, %c0_26] : memref<64x256xf32, #tpu.memory_space<vmem>>, vector<64x256xf32>
      %cst_27 = arith.constant dense<0.000000e+00> : vector<256xf32>
      %42 = vector.multi_reduction <add>, %41, %cst_27 [0] : vector<64x256xf32> to vector<256xf32>
      %43 = vector.shape_cast %42 : vector<256xf32> to vector<1x256xf32>
      %44 = arith.mulf %41, %41 : vector<64x256xf32>
      %cst_28 = arith.constant dense<0.000000e+00> : vector<256xf32>
      %45 = vector.multi_reduction <add>, %44, %cst_28 [0] : vector<64x256xf32> to vector<256xf32>
      %46 = vector.shape_cast %45 : vector<256xf32> to vector<1x256xf32>
      %cst_29 = arith.constant 1.562500e-02 : f32
      %47 = vector.broadcast %cst_29 : f32 to vector<1x256xf32>
      %48 = arith.mulf %43, %47 : vector<1x256xf32>
      %cst_30 = arith.constant 1.562500e-02 : f32
      %49 = vector.broadcast %cst_30 : f32 to vector<1x256xf32>
      %50 = arith.mulf %46, %49 : vector<1x256xf32>
      %51 = arith.mulf %48, %48 : vector<1x256xf32>
      %52 = arith.subf %50, %51 : vector<1x256xf32>
      %cst_31 = arith.constant 0.000000e+00 : f32
      %53 = vector.broadcast %cst_31 : f32 to vector<1x256xf32>
      %54 = arith.maximumf %52, %53 : vector<1x256xf32>
      %c0_32 = arith.constant 0 : index
      %c0_33 = arith.constant 0 : index
      %55 = vector.load %arg2[%c0_32, %c0_33] : memref<1x256xf32, #tpu.memory_space<vmem>>, vector<1x256xf32>
      %cst_34 = arith.constant 9.99999974E-6 : f32
      %56 = vector.broadcast %cst_34 : f32 to vector<1x256xf32>
      %57 = arith.addf %54, %56 : vector<1x256xf32>
      %58 = math.rsqrt %57 : vector<1x256xf32>
      %59 = arith.mulf %55, %58 : vector<1x256xf32>
      %c0_35 = arith.constant 0 : index
      %c0_36 = arith.constant 0 : index
      %60 = vector.load %arg11[%c0_35, %c0_36] : memref<1x256xf32, #tpu.memory_space<vmem>>, vector<1x256xf32>
      tpu.vector_store %arg11[%c0_35, %c0_36], %59 {strides = array<i32>} : memref<1x256xf32, #tpu.memory_space<vmem>>, vector<1x256xf32>,
      %c0_37 = arith.constant 0 : index
      %c0_38 = arith.constant 0 : index
      %61 = vector.load %arg3[%c0_37, %c0_38] : memref<1x256xf32, #tpu.memory_space<vmem>>, vector<1x256xf32>
      %c0_39 = arith.constant 0 : index
      %c0_40 = arith.constant 0 : index
      %62 = vector.load %arg11[%c0_39, %c0_40] : memref<1x256xf32, #tpu.memory_space<vmem>>, vector<1x256xf32>
      %63 = arith.mulf %48, %62 : vector<1x256xf32>
      %64 = arith.subf %61, %63 : vector<1x256xf32>
      %c0_41 = arith.constant 0 : index
      %c0_42 = arith.constant 0 : index
      %65 = vector.load %arg12[%c0_41, %c0_42] : memref<1x256xf32, #tpu.memory_space<vmem>>, vector<1x256xf32>
      tpu.vector_store %arg12[%c0_41, %c0_42], %64 {strides = array<i32>} : memref<1x256xf32, #tpu.memory_space<vmem>>, vector<1x256xf32>,
    } else {
    }
    %c32_i32 = arith.constant 32 : i32
    %3 = arith.muli %arg0, %c32_i32 : i32
    %4 = tpu.assume_multiple %3, 8 : i32
    %5 = arith.index_cast %4 : i32 to index
    %c0 = arith.constant 0 : index
    %6 = vector.load %arg1[%5, %c0] : memref<64x256xf32, #tpu.memory_space<vmem>>, vector<32x256xf32>
    %c0_1 = arith.constant 0 : index
    %c0_2 = arith.constant 0 : index
    %7 = vector.load %arg11[%c0_1, %c0_2] : memref<1x256xf32, #tpu.memory_space<vmem>>, vector<1x256xf32>
    %8 = vector.broadcast %7 : vector<1x256xf32> to vector<32x256xf32>
    %9 = arith.mulf %6, %8 : vector<32x256xf32>
    %c0_3 = arith.constant 0 : index
    %c0_4 = arith.constant 0 : index
    %10 = vector.load %arg12[%c0_3, %c0_4] : memref<1x256xf32, #tpu.memory_space<vmem>>, vector<1x256xf32>
    %11 = vector.broadcast %10 : vector<1x256xf32> to vector<32x256xf32>
    %12 = arith.addf %9, %11 : vector<32x256xf32>
    %c0_5 = arith.constant 0 : index
    %c0_6 = arith.constant 0 : index
    %13 = vector.load %arg4[%c0_5, %c0_6] : memref<256x128xf32, #tpu.memory_space<vmem>>, vector<256x128xf32>
    %c0_7 = arith.constant 0 : index
    %c0_8 = arith.constant 0 : index
    %14 = vector.load %arg5[%c0_7, %c0_8] : memref<1x128xf32, #tpu.memory_space<vmem>>, vector<1x128xf32>
    %c0_9 = arith.constant 0 : index
    %c0_10 = arith.constant 0 : index
    %15 = vector.load %arg6[%c0_9, %c0_10] : memref<128x128xf32, #tpu.memory_space<vmem>>, vector<128x128xf32>
    %c0_11 = arith.constant 0 : index
    %c0_12 = arith.constant 0 : index
    %16 = vector.load %arg7[%c0_11, %c0_12] : memref<1x128xf32, #tpu.memory_space<vmem>>, vector<1x128xf32>
    %c0_13 = arith.constant 0 : index
    %c0_14 = arith.constant 0 : index
    %17 = vector.load %arg8[%c0_13, %c0_14] : memref<128x128xf32, #tpu.memory_space<vmem>>, vector<128x128xf32>
    %c0_15 = arith.constant 0 : index
    %c0_16 = arith.constant 0 : index
    %18 = vector.load %arg9[%c0_15, %c0_16] : memref<1x128xf32, #tpu.memory_space<vmem>>, vector<1x128xf32>
    %cst = arith.constant dense<0.000000e+00> : vector<32x128xf32>
    %19 = tpu.matmul %12, %13, %cst {dimension_numbers = #tpu.dot_dimension_numbers<[1], [0], [0], [1], [0, 0, 1, 1], [], []>} : vector<32x256xf32>, vector<256x128xf32>, vector<32x128xf32> -> vector<32x128xf32>
    %20 = vector.broadcast %14 : vector<1x128xf32> to vector<32x128xf32>
    %21 = arith.addf %19, %20 : vector<32x128xf32>
    %cst_17 = arith.constant 0.000000e+00 : f32
    %22 = vector.broadcast %cst_17 : f32 to vector<32x128xf32>
    %23 = arith.maximumf %21, %22 : vector<32x128xf32>
    %cst_18 = arith.constant dense<0.000000e+00> : vector<32x128xf32>
    %24 = tpu.matmul %23, %15, %cst_18 {dimension_numbers = #tpu.dot_dimension_numbers<[1], [0], [0], [1], [0, 0, 1, 1], [], []>} : vector<32x128xf32>, vector<128x128xf32>, vector<32x128xf32> -> vector<32x128xf32>
    %25 = vector.broadcast %16 : vector<1x128xf32> to vector<32x128xf32>
    %26 = arith.addf %24, %25 : vector<32x128xf32>
    %cst_19 = arith.constant 0.000000e+00 : f32
    %27 = vector.broadcast %cst_19 : f32 to vector<32x128xf32>
    %28 = arith.maximumf %26, %27 : vector<32x128xf32>
    %cst_20 = arith.constant dense<0.000000e+00> : vector<32x128xf32>
    %29 = tpu.matmul %28, %17, %cst_20 {dimension_numbers = #tpu.dot_dimension_numbers<[1], [0], [0], [1], [0, 0, 1, 1], [], []>} : vector<32x128xf32>, vector<128x128xf32>, vector<32x128xf32> -> vector<32x128xf32>
    %30 = vector.broadcast %18 : vector<1x128xf32> to vector<32x128xf32>
    %31 = arith.addf %29, %30 : vector<32x128xf32>
    %32 = arith.mulf %31, %31 : vector<32x128xf32>
    %cst_21 = arith.constant dense<0.000000e+00> : vector<32xf32>
    %33 = vector.multi_reduction <add>, %32, %cst_21 [1] : vector<32x128xf32> to vector<32xf32>
    %34 = vector.shape_cast %33 : vector<32xf32> to vector<32x1xf32>
    %cst_22 = arith.constant 1.000000e-24 : f32
    %35 = vector.broadcast %cst_22 : f32 to vector<32x1xf32>
    %36 = arith.maximumf %34, %35 : vector<32x1xf32>
    %37 = math.rsqrt %36 : vector<32x1xf32>
    %38 = vector.broadcast %37 : vector<32x1xf32> to vector<32x128xf32>
    %39 = arith.mulf %31, %38 : vector<32x128xf32>
    %c0_23 = arith.constant 0 : index
    %c0_24 = arith.constant 0 : index
    %40 = vector.load %arg10[%c0_23, %c0_24] : memref<32x128xf32, #tpu.memory_space<vmem>>, vector<32x128xf32>
    tpu.vector_store %arg10[%c0_23, %c0_24], %39 {strides = array<i32>} : memref<32x128xf32, #tpu.memory_space<vmem>>, vector<32x128xf32>,
    return
  }
  func.func @transform_0(%arg0: i32) -> (i32, i32) {
    %c0_i32 = arith.constant 0 : i32
    %c0_i32_0 = arith.constant 0 : i32
    %c0_i32_1 = arith.constant 0 : i32
    return %c0_i32, %c0_i32_0 : i32, i32
  }
  func.func @transform_1(%arg0: i32) -> (i32, i32) {
    %c0_i32 = arith.constant 0 : i32
    %c0_i32_0 = arith.constant 0 : i32
    %c0_i32_1 = arith.constant 0 : i32
    return %c0_i32, %c0_i32_0 : i32, i32
  }
  func.func @transform_2(%arg0: i32) -> (i32, i32) {
    %c0_i32 = arith.constant 0 : i32
    %c0_i32_0 = arith.constant 0 : i32
    %c0_i32_1 = arith.constant 0 : i32
    return %c0_i32, %c0_i32_0 : i32, i32
  }
  func.func @transform_3(%arg0: i32) -> (i32, i32) {
    %c0_i32 = arith.constant 0 : i32
    %c0_i32_0 = arith.constant 0 : i32
    %c0_i32_1 = arith.constant 0 : i32
    return %c0_i32, %c0_i32_0 : i32, i32
  }
  func.func @transform_4(%arg0: i32) -> (i32, i32) {
    %c0_i32 = arith.constant 0 : i32
    %c0_i32_0 = arith.constant 0 : i32
    %c0_i32_1 = arith.constant 0 : i32
    return %c0_i32, %c0_i32_0 : i32, i32
  }
  func.func @transform_5(%arg0: i32) -> (i32, i32) {
    %c0_i32 = arith.constant 0 : i32
    %c0_i32_0 = arith.constant 0 : i32
    %c0_i32_1 = arith.constant 0 : i32
    return %c0_i32, %c0_i32_0 : i32, i32
  }
  func.func @transform_6(%arg0: i32) -> (i32, i32) {
    %c0_i32 = arith.constant 0 : i32
    %c0_i32_0 = arith.constant 0 : i32
    %c0_i32_1 = arith.constant 0 : i32
    return %c0_i32, %c0_i32_0 : i32, i32
  }
  func.func @transform_7(%arg0: i32) -> (i32, i32) {
    %c0_i32 = arith.constant 0 : i32
    %c0_i32_0 = arith.constant 0 : i32
    %c0_i32_1 = arith.constant 0 : i32
    return %c0_i32, %c0_i32_0 : i32, i32
  }
  func.func @transform_8(%arg0: i32) -> (i32, i32) {
    %c0_i32 = arith.constant 0 : i32
    %c0_i32_0 = arith.constant 0 : i32
    %c0_i32_1 = arith.constant 0 : i32
    return %c0_i32, %c0_i32_0 : i32, i32
  }
  func.func @transform_9(%arg0: i32) -> (i32, i32) {
    %c0_i32 = arith.constant 0 : i32
    %c0_i32_0 = arith.constant 0 : i32
    return %arg0, %c0_i32 : i32, i32
  }
}

</mosaic_0001>

<bundles_post_ra>
// kernel: tpu_custom_call.1
= control target key start
LH: loop header
LB: loop body
LE: loop exit
PB: predicated region body
PF: predicated region fallthrough
CT: control target
= control target key end

     0   :  { %s1999_s0 = inlined_call_operand.hbm [shape: f32[64,256], index: 0, kind: input, shape index: {}]   ;;  %s2000_s1 = inlined_call_operand.vmem [shape: f32[1,256], index: 1, kind: input, shape index: {}]   ;;  %s2001_s2 = inlined_call_operand.vmem [shape: f32[1,256], index: 2, kind: input, shape index: {}]   ;;  %s2002_s3 = inlined_call_operand.hbm [shape: f32[256,128], index: 3, kind: input, shape index: {}]   ;;  %s2003_s4 = inlined_call_operand.vmem [shape: f32[1,128], index: 4, kind: input, shape index: {}]   ;;  %s2004_s5 = inlined_call_operand.hbm [shape: f32[128,128], index: 5, kind: input, shape index: {}]   ;;  %s2005_s6 = inlined_call_operand.vmem [shape: f32[1,128], index: 6, kind: input, shape index: {}]   ;;  %s2006_s7 = inlined_call_operand.hbm [shape: f32[128,128], index: 7, kind: input, shape index: {}]   ;;  %s2007_s8 = inlined_call_operand.vmem [shape: f32[1,128], index: 8, kind: input, shape index: {}]   ;;  %s2008_s9 = inlined_call_operand.hbm [shape: f32[64,128], index: 9, kind: output, shape index: {}]  }
   0x1   :  { %2020 = sst [smem:[#allocation21_spill]] %s2002_s3 }
   0x2   :  { %14 = vsyncpa [#allocation5], 0 }
   0x3   :  { %15 = vsyncpa [#allocation8], 0 }
   0x4   :  { %16 = vsyncpa [#allocation11], 0 }
   0x5   :  { %17 = vsyncpa [#allocation6], 0 }
   0x6   :  { %19 = vsyncpa [#allocation6 + $0x1], 0  ;;  %s1717_s30 = smov 0   ;;  %s1719_s10 = smov 0  }
   0x7   :  { %s1721_s11 = smov 0   ;;  %s1723_s12 = smov 0  }
   0x8 LB: > { %2021 = sst [smem:[#allocation17_spill]] %s1649_s11  ;;  %s1738_s13 = sadd.s32 4294967295, %s1653_s12   ;;  %s1653_s12 = sphi %s1723_s12, %s2044_s12   ;;  %s1649_s11 = sphi %s1721_s11, %s2046_s11   ;;  %s1645_s10 = sphi %s1719_s10, %s2048_s10   ;;  %s1641_s30 = sphi %s1717_s30, %s2047_s30  }
   0x9   : > { %s1070_s14 = sadd.s32 4294967294, %s1653_s12   ;;  %s1742_s15 = sadd.s32 1, %s1653_s12  }
   0xa   : > { %2022 = sst [smem:[#allocation18_spill]] %s1742_s15  ;;  %s221_s16 = sadd.s32 1, %s1649_s11 }
   0xb   : > { %s218_s17 = ssub.s32 %s1653_s12, %s1742_s15  ;;  %p231_p0 = scmp.ne.s32.totalorder %s1649_s11, %s1645_s10 }
   0xc   : > { %p219_p1 = scmp.eq.s32.totalorder %s218_s17, 0  ;;  %p232_p2 = scmp.eq.s32.totalorder %s1738_s13, 1 }
   0xd   : > { %p237_p3 = scmp.ne.s32.totalorder %s1645_s10, %s1641_s30  ;;  %p238_p4 = scmp.eq.s32.totalorder %s1070_s14, 1 }
   0xe   : > { %s1753_s18 = scalar_select %p219_p1, %s1649_s11, %s221_s16  }
   0xf   : > { %p1755_p5 = por %p232_p2, %p231_p0  ;;  %p1759_p6 = por %p238_p4, %p237_p3 }
  0x10   : > { %2023 = sst [smem:[#allocation19_spill]] %s1753_s18  ;;  %p1071_p7 = scmp.ge.s32.totalorder %s1653_s12, 1 }
  0x11   : > { %s2024_s19 = scalar_select %p1755_p5, 1, 0 }
  0x12   : > { %s2025_s20 = scalar_select %p1759_p6, 1, 0 }
  0x13   : > { %p245_p8 = scmp.lt.s32.totalorder %s1653_s12, 3  ;;  %p2009_p10 = scmp.eq.s32.totalorder %s1738_s13, 0 }
  0x14   : > { %2026 = sst [smem:[#allocation20_spill]] %s2025_s20  ;;  %s1655_s22 = smov [#allocation7]  }
  0x15   : > { %p1767_p11 = pnand %p1071_p7, %p245_p8  ;;  %s276_s23 = sshll.u32 %s1655_s22, 4  ;;  %s277_s23 = int_to_ptr.vmem [resolvable:$true] %s276_s23 }
  0x16   : > { %s1656_s25 = smov [#allocation4]   ;;  %s2029_s3 = sld [smem:[#allocation21_spill]] }
  0x17   : > { %s2027_s21 = scalar_select %p1767_p11, 1, 0 }
  0x18   : > { %p1386_p12 = pneg %p1767_p11  ;;  %s257_s26 = sshll.u32 %s1656_s25, 4  ;;  %s1779_s26 = int_to_ptr.vmem [resolvable:$true] %s257_s26 }
  0x1a   : > { %p1775_p13 = pnand %p2009_p10, %p1386_p12 }
  0x1c   : > { %s1467_s29 = scalar_lea.hbm %s2029_s3, 4096  ;;  %p1789_p1 = pneg %p1775_p13 }
  0x1d   : > { %p1468_p0 = scmp.ne.s32.totalorder %s2029_s3, %s1467_s29  ;;  %p1474_p4 = scmp.lt.u32.totalorder %s1467_s29, %s2029_s3 }
  0x1f   : > { %p1470_p2 = pnand %p1789_p1, %p1468_p0 }
  0x21   : > { %p1471_p3 = pneg %p1470_p2 }
  0x23   : > { %p1476_p7 = pnand %p1474_p4, %p1471_p3 }
  0x25   : > { %1479 = shalt.err (!%p1476_p7)
}
  0x26   : > { %s1480_s27 = scalar_lea.vmem %s277_s23, 4096  ;;  %p1488_p10 = scmp.lt.s32.totalorder %s277_s23, %s277_s23 }
  0x27   : > { %p1481_p8 = scmp.ne.s32.totalorder %s277_s23, %s1480_s27  ;;  %p1489_p6 = scmp.lt.s32.totalorder %s1480_s27, %s1480_s27 }
  0x29   : > { %p1483_p12 = pnand %p1481_p8, %p1789_p1  ;;  %p1490_p5 = por %p1489_p6, %p1488_p10 }
  0x2b   : > { %p1484_p9 = pneg %p1483_p12 }
  0x2d   : > { %p1491_p11 = pnand %p1490_p5, %p1484_p9 }
  0x2f   : > { %1494 = shalt.err (!%p1491_p11)
}
  0x30   : > { %s2016_s28 = smov 128   ;;  %s2018_s14 = smov 8  }
  0x31   : > { %1392 = dma.hbm_to_vmem [thread:$0]  (!%p1775_p13), %s2029_s3, 4096, %s277_s23, [#allocation8], %s2016_s28, %s2016_s28, %s2018_s14  }
  0x32   : > { %s1495_s18 = scalar_lea.hbm %s1999_s0, 2048 }
  0x33   : > { %p1496_p5 = scmp.ne.s32.totalorder %s1999_s0, %s1495_s18  ;;  %p1502_p10 = scmp.lt.u32.totalorder %s1495_s18, %s1999_s0 }
  0x35   : > { %p1498_p6 = pnand %p1496_p5, %p1789_p1 }
  0x37   : > { %p1499_p9 = pneg %p1498_p6 }
  0x39   : > { %p1504_p11 = pnand %p1502_p10, %p1499_p9 }
  0x3b   : > { %1507 = shalt.err (!%p1504_p11)
}
  0x3c   : > { %s1508_s23 = scalar_lea.vmem %s1779_s26, 2048  ;;  %p1516_p4 = scmp.lt.s32.totalorder %s1779_s26, %s1779_s26 }
  0x3d   : > { %p1509_p0 = scmp.ne.s32.totalorder %s1779_s26, %s1508_s23  ;;  %p1517_p7 = scmp.lt.s32.totalorder %s1508_s23, %s1508_s23 }
  0x3f   : > { %p1511_p2 = pnand %p1509_p0, %p1789_p1  ;;  %p1518_p8 = por %p1517_p7, %p1516_p4 }
  0x41   : > { %p1512_p3 = pneg %p1511_p2 }
  0x43   : > { %p1519_p12 = pnand %p1518_p8, %p1512_p3 }
  0x45   : > { %1522 = shalt.err (!%p1519_p12)
}
  0x46   : > { %s1659_s11 = smov 256   ;;  %s1660_s15 = smov 16  }
  0x47   : > { %1389 = dma.hbm_to_vmem [thread:$0]  (!%p1775_p13), %s1999_s0, 2048, %s1779_s26, [#allocation5], %s1659_s11, %s1659_s11, %s1660_s15  }
  0x48   : > { %s1661_s29 = smov [#allocation9]   ;;  %s1662_s22 = smov [#allocation10]  }
  0x49   : > { %s292_s16 = sshll.u32 %s1661_s29, 4  ;;  %s308_s25 = sshll.u32 %s1662_s22, 4  ;;  %s293_s16 = int_to_ptr.vmem [resolvable:$true] %s292_s16  ;;  %s1831_s25 = int_to_ptr.vmem [resolvable:$true] %s308_s25 }
  0x4a   : > { %s1523_s28 = scalar_lea.hbm %s2004_s5, 2048 }
  0x4b   : > { %p1524_p5 = scmp.ne.s32.totalorder %s2004_s5, %s1523_s28  ;;  %p1530_p10 = scmp.lt.u32.totalorder %s1523_s28, %s2004_s5 }
  0x4d   : > { %p1526_p6 = pnand %p1524_p5, %p1789_p1 }
  0x4f   : > { %p1527_p9 = pneg %p1526_p6 }
  0x51   : > { %p1532_p11 = pnand %p1530_p10, %p1527_p9 }
  0x53   : > { %1535 = shalt.err (!%p1532_p11)
}
  0x54   : > { %s1536_s11 = scalar_lea.vmem %s293_s16, 2048  ;;  %p1544_p4 = scmp.lt.s32.totalorder %s293_s16, %s293_s16 }
  0x55   : > { %p1537_p0 = scmp.ne.s32.totalorder %s293_s16, %s1536_s11  ;;  %p1545_p7 = scmp.lt.s32.totalorder %s1536_s11, %s1536_s11 }
  0x57   : > { %p1539_p2 = pnand %p1537_p0, %p1789_p1  ;;  %p1546_p8 = por %p1545_p7, %p1544_p4 }
  0x59   : > { %p1540_p3 = pneg %p1539_p2 }
  0x5b   : > { %p1547_p12 = pnand %p1546_p8, %p1540_p3 }
  0x5d   : > { %1550 = shalt.err (!%p1547_p12)
}
  0x5e   : > { %s2031_s3 = smov 8   ;;  %s2032_s14 = smov 128  }
  0x5f   : > { %1395 = dma.hbm_to_vmem [thread:$0]  (!%p1775_p13), %s2004_s5, 2048, %s293_s16, [#allocation8], %s2032_s14, %s2032_s14, %s2031_s3  }
  0x60   : > { %s1551_s22 = scalar_lea.hbm %s2006_s7, 2048 }
  0x61   : > { %p1552_p5 = scmp.ne.s32.totalorder %s2006_s7, %s1551_s22  ;;  %p1558_p10 = scmp.lt.u32.totalorder %s1551_s22, %s2006_s7 }
  0x63   : > { %p1554_p6 = pnand %p1552_p5, %p1789_p1 }
  0x65   : > { %p1555_p9 = pneg %p1554_p6 }
  0x67   : > { %p1560_p11 = pnand %p1558_p10, %p1555_p9 }
  0x69   : > { %1563 = shalt.err (!%p1560_p11)
}
  0x6a   : > { %s1564_s16 = scalar_lea.vmem %s1831_s25, 2048  ;;  %p1572_p4 = scmp.lt.s32.totalorder %s1831_s25, %s1831_s25 }
  0x6b   : > { %p1565_p0 = scmp.ne.s32.totalorder %s1831_s25, %s1564_s16  ;;  %p1573_p7 = scmp.lt.s32.totalorder %s1564_s16, %s1564_s16 }
  0x6d   : > { %p1567_p2 = pnand %p1565_p0, %p1789_p1  ;;  %p1574_p8 = por %p1573_p7, %p1572_p4 }
  0x6f   : > { %p1568_p3 = pneg %p1567_p2 }
  0x71   : > { %p1575_p12 = pnand %p1574_p8, %p1568_p3 }
  0x73   : > { %1578 = shalt.err (!%p1575_p12)
}
  0x74   : > { %1398 = dma.hbm_to_vmem [thread:$0]  (!%p1775_p13), %s2006_s7, 2048, %s1831_s25, [#allocation11], %s2032_s14, %s2032_s14, %s2031_s3  }
  0x75   : > { %p2033_p5 = scmp.ne.s32.totalorder %s2027_s21, 0 }
  0x76   : > { %p2034_p1 = scmp.eq.s32.totalorder (!%p2033_p5), %s1738_s13, 0 }
  0x77   : > { %327 = sbr.rel (%p2033_p5) target bundleno = 1090 (0x442), region = 56 }
  0x7e   : > { %1624 = dma.done.wait (%p2034_p1), [#allocation5], 2048   ;;  %p2035_p6 = pmov %p2034_p1 }
  0x7f   : > { %p2036_p9 = pmov %p2034_p1 }
  0x80   : > { %1626 = vsyncadd (%p2035_p6), [#allocation5], 4294965248 }
  0x81   : > { %1628 = dma.done.wait (%p2036_p9), [#allocation8], 6144   ;;  %p2037_p10 = pmov %p2034_p1 }
  0x82   : > { %p2038_p11 = pmov %p2034_p1 }
  0x83   : > { %1630 = vsyncadd (%p2037_p10), [#allocation8], 4294961152 }
  0x84   : > { %1632 = dma.done.wait (%p2038_p11), [#allocation11], 2048   ;;  %p2039_p13 = pmov %p2034_p1 }
  0x85   : > { %s367_s21 = sand.u32 1, %s1645_s10   ;;  %p2040_p0 = scmp.ne.s32.totalorder %s1738_s13, 0 }
  0x86   : > { %1634 = vsyncadd (%p2039_p13), [#allocation11], 4294965248  ;;  %s1081_s24 = sshll.u32 %s367_s21, 5  ;;  %v375_v0 = vld [vmem:[#allocation4] sm:$0xff] (!%p2040_p0)  ;;  %v376_v1 = vld [vmem:[#allocation4 + $0x8] sm:$0xff] (!%p2040_p0) }
  0x87   : > { %s1897_s17 = scalar_lea.vmem [#allocation12], %s1081_s24  ;;  %374 = sbr.rel (%p2040_p0) target bundleno = 213 (0xd5), region = 76  ;;  %v377_v2 = vld [vmem:[#allocation4 + $0x10] sm:$0xff] (!%p2040_p0)  ;;  %v378_v3 = vld [vmem:[#allocation4 + $0x18] sm:$0xff] (!%p2040_p0)  ;;  %v379_v4 = vld [vmem:[#allocation4 + $0x20] sm:$0xff] (!%p2040_p0)  ;;  %v417_v7 = vmul.f32 (!%p2040_p0), %v375_v0, %v375_v0  ;;  %v418_v10 = vmul.f32 (!%p2040_p0), %v376_v1, %v376_v1 }
  0x88   : > { %v380_v5 = vld [vmem:[#allocation4 + $0x28] sm:$0xff] (!%p2040_p0)  ;;  %v391_v6 = vadd.f32 (!%p2040_p0), %v377_v2, %v375_v0  ;;  %v381_v8 = vld [vmem:[#allocation4 + $0x30] sm:$0xff] (!%p2040_p0)  ;;  %v404_v9 = vadd.f32 (!%p2040_p0), %v378_v3, %v376_v1  ;;  %v419_v11 = vmul.f32 (!%p2040_p0), %v377_v2, %v377_v2  ;;  %v420_v12 = vmul.f32 (!%p2040_p0), %v378_v3, %v378_v3  ;;  %v382_v13 = vld [vmem:[#allocation4 + $0x38] sm:$0xff] (!%p2040_p0) }
  0x89   : > { %v383_v15 = vld [vmem:[#allocation4 + $0x40] sm:$0xff] (!%p2040_p0)  ;;  %v421_v17 = vmul.f32 (!%p2040_p0), %v379_v4, %v379_v4  ;;  %v422_v18 = vmul.f32 (!%p2040_p0), %v380_v5, %v380_v5  ;;  %v384_v19 = vld [vmem:[#allocation4 + $0x48] sm:$0xff] (!%p2040_p0)  ;;  %v423_v21 = vmul.f32 (!%p2040_p0), %v381_v8, %v381_v8  ;;  %v385_v22 = vld [vmem:[#allocation4 + $0x50] sm:$0xff] (!%p2040_p0)  ;;  %v424_v24 = vmul.f32 (!%p2040_p0), %v382_v13, %v382_v13 }
  0x8a   : > { %v392_v14 = vadd.f32 (!%p2040_p0), %v391_v6, %v379_v4  ;;  %v405_v16 = vadd.f32 (!%p2040_p0), %v404_v9, %v380_v5  ;;  %v433_v25 = vadd.f32 (!%p2040_p0), %v419_v11, %v417_v7  ;;  %v446_v26 = vadd.f32 (!%p2040_p0), %v420_v12, %v418_v10  ;;  %v386_v27 = vld [vmem:[#allocation4 + $0x58] sm:$0xff] (!%p2040_p0)  ;;  %v387_v30 = vld [vmem:[#allocation4 + $0x60] sm:$0xff] (!%p2040_p0)  ;;  %v388_v35 = vld [vmem:[#allocation4 + $0x68] sm:$0xff] (!%p2040_p0) }
  0x8b   : > { %v425_v29 = vmul.f32 (!%p2040_p0), %v383_v15, %v383_v15  ;;  %v426_v32 = vmul.f32 (!%p2040_p0), %v384_v19, %v384_v19  ;;  %v427_v37 = vmul.f32 (!%p2040_p0), %v385_v22, %v385_v22  ;;  %v389_v38 = vld [vmem:[#allocation4 + $0x70] sm:$0xff] (!%p2040_p0)  ;;  %v428_v40 = vmul.f32 (!%p2040_p0), %v386_v27, %v386_v27  ;;  %v390_v43 = vld [vmem:[#allocation4 + $0x78] sm:$0xff] (!%p2040_p0) }
  0x8c   : > { %v393_v20 = vadd.f32 (!%p2040_p0), %v392_v14, %v381_v8  ;;  %v406_v23 = vadd.f32 (!%p2040_p0), %v405_v16, %v382_v13  ;;  %v434_v33 = vadd.f32 (!%p2040_p0), %v433_v25, %v421_v17  ;;  %v447_v34 = vadd.f32 (!%p2040_p0), %v446_v26, %v422_v18 }
  0x8d   : > { %v429_v45 = vmul.f32 (!%p2040_p0), %v387_v30, %v387_v30  ;;  %v430_v47 = vmul.f32 (!%p2040_p0), %v388_v35, %v388_v35  ;;  %v431_v51 = vmul.f32 (!%p2040_p0), %v389_v38, %v389_v38  ;;  %v432_v53 = vmul.f32 (!%p2040_p0), %v390_v43, %v390_v43 }
  0x8e   : > { %v394_v28 = vadd.f32 %v393_v20, %v383_v15  ;;  %v407_v31 = vadd.f32 %v406_v23, %v384_v19  ;;  %v435_v41 = vadd.f32 %v434_v33, %v423_v21  ;;  %v448_v42 = vadd.f32 %v447_v34, %v424_v24 }
  0x8f   : > { %v480_v34 = vlaneseq }
  0x90   : > { %v395_v36 = vadd.f32 %v394_v28, %v385_v22  ;;  %v408_v39 = vadd.f32 %v407_v31, %v386_v27  ;;  %v436_v48 = vadd.f32 %v435_v41, %v425_v29  ;;  %v449_v49 = vadd.f32 %v448_v42, %v426_v32  ;;  %v469_v42 = vld [vmem:[%s2000_s1] sm:$0x3] }
  0x91   : > { %v1663_v32 = vmov 1966171168   ;;  %vm495_vm0 = vcmp.lt.s32.totalorder %v480_v34, 256 }
  0x92   : > { %v396_v44 = vadd.f32 %v395_v36, %v387_v30  ;;  %v409_v46 = vadd.f32 %v408_v39, %v388_v35  ;;  %v437_v54 = vadd.f32 %v436_v48, %v427_v37  ;;  %v450_v55 = vadd.f32 %v449_v49, %v428_v40 }
  0x93   : > { %v478_v33 = vunpack.c.l.s4 %v1663_v32  ;;  %v481_v36 = vshrl.u32 %v480_v34, 7 }
  0x94   : > { %v397_v50 = vadd.f32 %v396_v44, %v389_v38  ;;  %v410_v52 = vadd.f32 %v409_v46, %v390_v43  ;;  %v438_v58 = vadd.f32 %v437_v54, %v429_v45  ;;  %v451_v59 = vadd.f32 %v450_v55, %v430_v47  ;;  %v498_v54 = vld [vmem:[%s2001_s2] sm:$0x3] }
  0x95   : > { %v479_v35 = vunpack.c.0.s8 %v478_v33  ;;  %v503_v45 = vsub.s32 0, %v481_v36  ;;  %v507_v46 = vsub.s32 1, %v481_v36 }
  0x96   : > { %v398_v56 = vrot.slane %v397_v50, 4  ;;  %v411_v57 = vrot.slane %v410_v52, 4  ;;  %v439_v62 = vadd.f32 %v438_v58, %v431_v51  ;;  %v452_v63 = vadd.f32 %v451_v59, %v432_v53 }
  0x97   : > { %v482_v38 = vsub.s32 %v479_v35, %v481_v36 }
  0x98   : > { %v399_v60 = vadd.f32 %v398_v56, %v397_v50  ;;  %v412_v61 = vadd.f32 %v411_v57, %v410_v52  ;;  %v440_v2 = vrot.slane %v439_v62, 4  ;;  %v453_v3 = vrot.slane %v452_v63, 4 }
  0x9a   : > { %v400_v0 = vrot.slane %v399_v60, 2  ;;  %v413_v1 = vrot.slane %v412_v61, 2  ;;  %v441_v6 = vadd.f32 %v440_v2, %v439_v62  ;;  %v454_v7 = vadd.f32 %v453_v3, %v452_v63 }
  0x9c   : > { %v401_v4 = vadd.f32 %v400_v0, %v399_v60  ;;  %v414_v5 = vadd.f32 %v413_v1, %v412_v61  ;;  %v442_v10 = vrot.slane %v441_v6, 2  ;;  %v455_v11 = vrot.slane %v454_v7, 2 }
  0x9e   : > { %v402_v8 = vrot.slane %v401_v4, 1  ;;  %v415_v9 = vrot.slane %v414_v5, 1  ;;  %v443_v14 = vadd.f32 %v442_v10, %v441_v6  ;;  %v456_v15 = vadd.f32 %v455_v11, %v454_v7 }
  0xa0   : > { %v403_v12 = vadd.f32 %v402_v8, %v401_v4  ;;  %v416_v13 = vadd.f32 %v415_v9, %v414_v5  ;;  %v444_v17 = vrot.slane %v443_v14, 1  ;;  %v457_v18 = vrot.slane %v456_v15, 1 }
  0xa2   : > { %v459_v16 = vmul.f32 0.015625, %v403_v12  ;;  %v460_v19 = vmul.f32 0.015625, %v416_v13  ;;  %v445_v20 = vadd.f32 %v444_v17, %v443_v14  ;;  %v458_v21 = vadd.f32 %v457_v18, %v456_v15 }
  0xa4   : > { %v463_v22 = vmul.f32 %v459_v16, %v459_v16  ;;  %v464_v23 = vmul.f32 %v460_v19, %v460_v19  ;;  %v461_v24 = vmul.f32 0.015625, %v445_v20  ;;  %v462_v25 = vmul.f32 0.015625, %v458_v21 }
  0xa6   : > { %v465_v26 = vsub.f32 %v461_v24, %v463_v22  ;;  %v466_v27 = vsub.f32 %v462_v25, %v464_v23 }
  0xa8   : > { %v467_v28 = vmax.f32 %v465_v26, 0.0  ;;  %v468_v29 = vmax.f32 %v466_v27, 0.0 }
  0xaa   : > { %v470_v30 = vadd.f32 1e-05, %v467_v28  ;;  %v471_v31 = vadd.f32 1e-05, %v468_v29 }
  0xac   : > { %1455 = vrsqrt.f32 %v470_v30 }
  0xad   : > { %1457 = vrsqrt.f32 %v471_v31 }
  0xb6   : > { %v1456_v37 = vpop.eup %1455 }
  0xb7   : > { %v1458_v39 = vpop.eup %1457 }
  0xb8   : > { %v476_v40 = vcombine.low %v1456_v37, %v1458_v39 }
  0xba   : > { %v483_v41 = vrot.slane %v476_v40, %v482_v38 }
  0xbc   : > { %v490_v43 = vrot.slane %v483_v41, %v482_v38 }
  0xbe   : > { %v492_v44 = vmul.f32 %v490_v43, %v469_v42 }
  0xc0   : > { %497 = vst.msk [vmem:[#allocation2] sm:$0x3] %vm495_vm0, %v492_v44 }
  0xc7   : > { %v499_v47 = vld [vmem:[#allocation2] sm:$0x3] }
  0xc8   : > { %v504_v48 = vrot.slane %v499_v47, %v503_v45  ;;  %v508_v49 = vrot.slane %v499_v47, %v507_v46 }
  0xca   : > { %v511_v50 = vmul.f32 %v504_v48, %v459_v16  ;;  %v512_v51 = vmul.f32 %v508_v49, %v460_v19 }
  0xcc   : > { %v515_v52 = vcombine.low %v511_v50, %v512_v51 }
  0xce   : > { %v522_v53 = vrot.slane %v515_v52, %v482_v38 }
  0xd0   : > { %v529_v55 = vrot.slane %v522_v53, %v482_v38 }
  0xd2   : > { %v531_v56 = vsub.f32 %v498_v54, %v529_v55 }
  0xd4   : > { %532 = vst.msk [vmem:[#allocation3] sm:$0x3] %vm495_vm0, %v531_v56 }
  0xd5 PF: > { %v603_v57 = vld [vmem:[#allocation7 + $0x80] sm:$0xff]  ;;  %v604_v58 = vld [vmem:[#allocation7 + $0x88] sm:$0xff]  ;;  %s1083_s20 = sshll.u32 %s1738_s13, 5  ;;  %v549_v60 = vlaneseq  ;;  %v605_v63 = vld [vmem:[#allocation7 + $0x90] sm:$0xff]  ;;  %s1095_s24 = sshll.u32 %s1738_s13, 9 }
  0xd6   : > { %v587_v59 = vld [vmem:[#allocation7] sm:$0xff]  ;;  %v1256_v61 = vpack.c.bf16 %v604_v58, %v603_v57  ;;  %v588_v62 = vld [vmem:[#allocation7 + $0x8] sm:$0xff]  ;;  %v606_v0 = vld [vmem:[#allocation7 + $0x98] sm:$0xff]  ;;  %s534_s29 = sshra.s32 %s1083_s20, 3  ;;  %s977_s25 = sshll.u32 %s1897_s17, 4  ;;  %s1953_s25 = int_to_ptr.vmem [resolvable:$true] %s977_s25 }
  0xd7   : > { %v1258_v1 = vpack.c.bf16 %v588_v62, %v587_v59  ;;  %v1260_v2 = vpack.c.bf16 %v606_v0, %v605_v63  ;;  %v589_v3 = vld [vmem:[#allocation7 + $0x10] sm:$0xff]  ;;  %v590_v4 = vld [vmem:[#allocation7 + $0x18] sm:$0xff]  ;;  %v607_v5 = vld [vmem:[#allocation7 + $0xa0] sm:$0xff]  ;;  %v1908_v8 = vshrl.u32 %v549_v60, 7  ;;  %s1094_s22 = sshll.u32 %s534_s29, 4  ;;  %s1951_s28 = scalar_lea.hbm %s2008_s9, %s1095_s24 }
  0xd8   : > { %1257 = vmatprep.subr.bf16.mxu0 %v1256_v61  ;;  %v608_v6 = vld [vmem:[#allocation7 + $0xa8] sm:$0xff]  ;;  %v1262_v7 = vpack.c.bf16 %v590_v4, %v589_v3  ;;  %v591_v10 = vld [vmem:[#allocation7 + $0x20] sm:$0xff]  ;;  %v609_v12 = vld [vmem:[#allocation7 + $0xb0] sm:$0xff]  ;;  %s1911_s27 = scalar_lea.vmem [#allocation4], %s1094_s22  ;;  %s1958_s20 = scalar_lea.sflag [#allocation6], %s367_s21 }
  0xd9   : > { %1259 = vmatpush3.bf16.msra.mxu0 %v1258_v1  ;;  %v1264_v9 = vpack.c.bf16 %v608_v6, %v607_v5  ;;  %v592_v11 = vld [vmem:[#allocation7 + $0x28] sm:$0xff]  ;;  %v610_v13 = vld [vmem:[#allocation7 + $0xb8] sm:$0xff]  ;;  %v555_v15 = vsub.s32 1, %v1908_v8  ;;  %v593_v17 = vld [vmem:[#allocation7 + $0x30] sm:$0xff]  ;;  %v551_v46 = vsub.s32 0, %v1908_v8  ;;  %s1579_s29 = scalar_lea.vmem %s1953_s25, 512 }
  0xda   : > { %1261 = vmatprep.subr.bf16.mxu0 %v1260_v2  ;;  %v1266_v14 = vpack.c.bf16 %v592_v11, %v591_v10  ;;  %v1268_v16 = vpack.c.bf16 %v610_v13, %v609_v12  ;;  %v594_v18 = vld [vmem:[#allocation7 + $0x38] sm:$0xff]  ;;  %v611_v19 = vld [vmem:[#allocation7 + $0xc0] sm:$0xff]  ;;  %v612_v20 = vld [vmem:[#allocation7 + $0xc8] sm:$0xff]  ;;  %p1580_p2 = scmp.ne.s32.totalorder %s1953_s25, %s1579_s29  ;;  %p2041_p3 = scmp.ne.s32.totalorder %s2024_s19, 0 }
  0xdb   : > { %v540_v21 = vld [vmem:[%s1911_s27 + $0x8] sm:$0xff]  ;;  %v547_v22 = vld [vmem:[#allocation2] sm:$0x3]  ;;  %v567_v23 = vld [vmem:[#allocation3] sm:$0x3]  ;;  %v1270_v24 = vpack.c.bf16 %v594_v18, %v593_v17  ;;  %v1272_v27 = vpack.c.bf16 %v612_v20, %v611_v19  ;;  %s1664_s13 = smov [#allocation12]  }
  0xdc   : > { %v1914_v25 = vrot.slane %v547_v22, %v555_v15  ;;  %v1916_v26 = vrot.slane %v567_v23, %v555_v15  ;;  %v595_v28 = vld [vmem:[#allocation7 + $0x40] sm:$0xff]  ;;  %v596_v29 = vld [vmem:[#allocation7 + $0x48] sm:$0xff]  ;;  %v613_v30 = vld [vmem:[#allocation7 + $0xd0] sm:$0xff]  ;;  %v552_v56 = vrot.slane %v547_v22, %v551_v46  ;;  %v572_v2 = vrot.slane %v567_v23, %v551_v46  ;;  %p1581_p4 = pnand %p1580_p2, %p2041_p3  ;;  %s1583_s22 = sshll.u32 %s1664_s13, 4  ;;  %s1584_s22 = int_to_ptr.vmem [resolvable:$false] %s1583_s22 }
  0xdd   : > { %1263 = vmatpush3.bf16.msra.mxu0 %v1262_v7  ;;  %v614_v31 = vld [vmem:[#allocation7 + $0xd8] sm:$0xff]  ;;  %v620_v33 = vld [vmem:[#allocation9] sm:$0xff]  ;;  %v621_v34 = vld [vmem:[#allocation9 + $0x8] sm:$0xff]  ;;  %v1274_v37 = vpack.c.bf16 %v596_v29, %v595_v28  ;;  %p1586_p8 = scmp.lt.s32.totalorder %s1953_s25, %s1584_s22 }
  0xde   : > { %1265 = vmatprep.subr.bf16.mxu0 %v1264_v9  ;;  %v560_v32 = vmul.f32 %v1914_v25, %v540_v21  ;;  %v622_v35 = vld [vmem:[#allocation9 + $0x10] sm:$0xff]  ;;  %v623_v36 = vld [vmem:[#allocation9 + $0x18] sm:$0xff]  ;;  %v1276_v39 = vpack.c.bf16 %v614_v31, %v613_v30  ;;  %v615_v42 = vld [vmem:[#allocation7 + $0xe0] sm:$0xff]  ;;  %v1288_v44 = vpack.c.bf16 %v621_v34, %v620_v33  ;;  %p1582_p7 = pneg %p1581_p4 }
  0xdf   : > { %v597_v40 = vld [vmem:[#allocation7 + $0x50] sm:$0xff]  ;;  %v598_v41 = vld [vmem:[#allocation7 + $0x58] sm:$0xff]  ;;  %v616_v43 = vld [vmem:[#allocation7 + $0xe8] sm:$0xff]  ;;  %v1292_v45 = vpack.c.bf16 %v623_v36, %v622_v35 }
  0xe0   : > { %v580_v38 = vadd.f32 %v1916_v26, %v560_v32  ;;  %v624_v47 = vld [vmem:[#allocation9 + $0x20] sm:$0xff]  ;;  %v625_v48 = vld [vmem:[#allocation9 + $0x28] sm:$0xff]  ;;  %v1278_v49 = vpack.c.bf16 %v598_v41, %v597_v40  ;;  %1289 = vmatprep.subr.bf16.mxu1 %v1288_v44  ;;  %v1280_v50 = vpack.c.bf16 %v616_v43, %v615_v42  ;;  %v617_v53 = vld [vmem:[#allocation7 + $0xf0] sm:$0xff] }
  0xe1   : > { %1267 = vmatpush3.bf16.msra.mxu0 %v1266_v14  ;;  %v599_v51 = vld [vmem:[#allocation7 + $0x60] sm:$0xff]  ;;  %v600_v52 = vld [vmem:[#allocation7 + $0x68] sm:$0xff]  ;;  %1291 = vmatpush3.bf16.msra.mxu1 %v1288_v44  ;;  %v618_v54 = vld [vmem:[#allocation7 + $0xf8] sm:$0xff]  ;;  %v1296_v55 = vpack.c.bf16 %v625_v48, %v624_v47 }
  0xe2   : > { %1269 = vmatprep.subr.bf16.mxu0 %v1268_v16  ;;  %724 = vmatprep.mubr.f32.mxu0 %v580_v38  ;;  %v626_v57 = vld [vmem:[#allocation9 + $0x30] sm:$0xff]  ;;  %v627_v58 = vld [vmem:[#allocation9 + $0x38] sm:$0xff]  ;;  %v1282_v59 = vpack.c.bf16 %v600_v52, %v599_v51  ;;  %v1284_v61 = vpack.c.bf16 %v618_v54, %v617_v53  ;;  %v628_v4 = vld [vmem:[#allocation9 + $0x40] sm:$0xff] }
  0xe3   : > { %1293 = vmatprep.subr.bf16.mxu1 %v1292_v45  ;;  %v539_v60 = vld [vmem:[%s1911_s27] sm:$0xff]  ;;  %v601_v62 = vld [vmem:[#allocation7 + $0x70] sm:$0xff]  ;;  %v1300_v1 = vpack.c.bf16 %v627_v58, %v626_v57  ;;  %v629_v5 = vld [vmem:[#allocation9 + $0x48] sm:$0xff] }
  0xe4   : > { %v602_v63 = vld [vmem:[#allocation7 + $0x78] sm:$0xff]  ;;  %v559_v3 = vmul.f32 %v552_v56, %v539_v60  ;;  %v541_v8 = vld [vmem:[%s1911_s27 + $0x10] sm:$0xff]  ;;  %v544_v9 = vld [vmem:[%s1911_s27 + $0x28] sm:$0xff]  ;;  %v1304_v10 = vpack.c.bf16 %v629_v5, %v628_v4 }
  0xe5   : > { %1271 = vmatpush3.bf16.msra.mxu0 %v1270_v24  ;;  %v542_v0 = vld [vmem:[%s1911_s27 + $0x18] sm:$0xff]  ;;  %1295 = vmatpush3.bf16.msra.mxu1 %v1292_v45  ;;  %v1286_v6 = vpack.c.bf16 %v602_v63, %v601_v62  ;;  %v561_v12 = vmul.f32 %v552_v56, %v541_v8  ;;  %v564_v14 = vmul.f32 %v1914_v25, %v544_v9  ;;  %v543_v15 = vld [vmem:[%s1911_s27 + $0x20] sm:$0xff]  ;;  %v545_v21 = vld [vmem:[%s1911_s27 + $0x30] sm:$0xff] }
  0xe6   : > { %1273 = vmatprep.subr.bf16.mxu0 %v1272_v27  ;;  %1297 = vmatprep.subr.bf16.mxu1 %v1296_v55  ;;  %v562_v7 = vmul.f32 %v1914_v25, %v542_v0  ;;  %v579_v11 = vadd.f32 %v572_v2, %v559_v3  ;;  %v546_v16 = vld [vmem:[%s1911_s27 + $0x38] sm:$0xff]  ;;  %v563_v18 = vmul.f32 %v552_v56, %v543_v15  ;;  %v632_v31 = vld [vmem:[#allocation9 + $0x60] sm:$0xff]  ;;  %v633_v32 = vld [vmem:[#allocation9 + $0x68] sm:$0xff]  ;;  %s1585_s27 = scalar_lea.vmem %s1584_s22, 1024 }
  0xe7   : > { %v581_v17 = vadd.f32 %v572_v2, %v561_v12  ;;  %v584_v19 = vadd.f32 %v1916_v26, %v564_v14  ;;  %v566_v20 = vmul.f32 %v1914_v25, %v546_v16  ;;  %v565_v23 = vmul.f32 %v552_v56, %v545_v21  ;;  %v630_v28 = vld [vmem:[#allocation9 + $0x50] sm:$0xff]  ;;  %v631_v29 = vld [vmem:[#allocation9 + $0x58] sm:$0xff]  ;;  %v638_v36 = vld [vmem:[#allocation10 + $0x8] sm:$0xff]  ;;  %p1587_p12 = scmp.lt.s32.totalorder %s1585_s27, %s1579_s29 }
  0xe8   : > { %v582_v13 = vadd.f32 %v1916_v26, %v562_v7  ;;  %v583_v22 = vadd.f32 %v572_v2, %v563_v18  ;;  %v1308_v30 = vpack.c.bf16 %v631_v29, %v630_v28  ;;  %v1312_v25 = vpack.c.bf16 %v633_v32, %v632_v31  ;;  %v634_v33 = vld [vmem:[#allocation9 + $0x70] sm:$0xff]  ;;  %v635_v34 = vld [vmem:[#allocation9 + $0x78] sm:$0xff]  ;;  %v641_v41 = vld [vmem:[#allocation10 + $0x20] sm:$0xff] }
  0xe9   : > { %1275 = vmatpush3.bf16.msra.mxu0 %v1274_v37  ;;  %1299 = vmatpush3.bf16.msra.mxu1 %v1296_v55  ;;  %v586_v24 = vadd.f32 %v1916_v26, %v566_v20  ;;  %v585_v27 = vadd.f32 %v572_v2, %v565_v23  ;;  %v1316_v35 = vpack.c.bf16 %v635_v34, %v634_v33  ;;  %v637_v26 = vld [vmem:[#allocation10] sm:$0xff]  ;;  %v639_v37 = vld [vmem:[#allocation10 + $0x10] sm:$0xff]  ;;  %v642_v42 = vld [vmem:[#allocation10 + $0x28] sm:$0xff]  ;;  %p1588_p5 = por %p1587_p12, %p1586_p8 }
  0xea   : > { %1277 = vmatprep.subr.bf16.mxu0 %v1276_v39  ;;  %1301 = vmatprep.subr.bf16.mxu1 %v1300_v1  ;;  %v1320_v38 = vpack.c.bf16 %v638_v36, %v637_v26  ;;  %v640_v39 = vld [vmem:[#allocation10 + $0x18] sm:$0xff]  ;;  %v1328_v43 = vpack.c.bf16 %v642_v42, %v641_v41  ;;  %v643_v44 = vld [vmem:[#allocation10 + $0x30] sm:$0xff]  ;;  %v645_v47 = vld [vmem:[#allocation10 + $0x40] sm:$0xff] }
  0xeb   : > { %v1324_v40 = vpack.c.bf16 %v640_v39, %v639_v37  ;;  %v644_v45 = vld [vmem:[#allocation10 + $0x38] sm:$0xff]  ;;  %v646_v48 = vld [vmem:[#allocation10 + $0x48] sm:$0xff]  ;;  %v649_v53 = vld [vmem:[#allocation10 + $0x60] sm:$0xff]  ;;  %p1589_p1 = pnand %p1588_p5, %p1582_p7 }
  0xec   : > { %v1332_v46 = vpack.c.bf16 %v644_v45, %v643_v44  ;;  %v648_v51 = vld [vmem:[#allocation10 + $0x58] sm:$0xff]  ;;  %v650_v54 = vld [vmem:[#allocation10 + $0x68] sm:$0xff] }
  0xed   : > { %1279 = vmatpush3.bf16.msra.mxu0 %v1278_v49  ;;  %1303 = vmatpush3.bf16.msra.mxu1 %v1300_v1  ;;  %v1336_v49 = vpack.c.bf16 %v646_v48, %v645_v47  ;;  %v1344_v55 = vpack.c.bf16 %v650_v54, %v649_v53  ;;  %v1086_v58 = vld [vmem:[%s2003_s4] ss:$0 sm:$0xff] }
  0xee   : > { %1281 = vmatprep.subr.bf16.mxu0 %v1280_v50  ;;  %1305 = vmatprep.subr.bf16.mxu1 %v1304_v10  ;;  %v647_v50 = vld [vmem:[#allocation10 + $0x50] sm:$0xff]  ;;  %v652_v14 = vld [vmem:[#allocation10 + $0x78] sm:$0xff] }
  0xef   : > { %v1340_v52 = vpack.c.bf16 %v648_v51, %v647_v50  ;;  %v1087_v16 = vld [vmem:[%s2005_s6] ss:$0 sm:$0xff] }
  0xf0   : > { %v1088_v31 = vld [vmem:[%s2007_s8] ss:$0 sm:$0xff] }
  0xf1   : > { %1283 = vmatpush3.bf16.msra.mxu0 %v1282_v59  ;;  %1307 = vmatpush3.bf16.msra.mxu1 %v1304_v10 }
  0xf2   : > { %1285 = vmatprep.subr.bf16.mxu0 %v1284_v61  ;;  %1309 = vmatprep.subr.bf16.mxu1 %v1308_v30 }
  0xf5   : > { %1287 = vmatpush3.bf16.msra.mxu0 %v1286_v6  ;;  %1311 = vmatpush3.bf16.msra.mxu1 %v1308_v30 }
  0xf6   : > { %1313 = vmatprep.subr.bf16.mxu1 %v1312_v25  ;;  %1321 = vmatprep.subr.bf16.mxu0 %v1320_v38 }
  0xf8   : > { %725 = vmatmul.mubr.f32.vlgmr.msra.gmra.mrb[0].mxu0 %v579_v11 }
  0xf9   : > { %729 = vmatprep.mubr.f32.mxu0 %v582_v13  ;;  %1315 = vmatpush3.bf16.msra.mxu1 %v1312_v25  ;;  %v651_v13 = vld [vmem:[#allocation10 + $0x70] sm:$0xff] }
  0xfa   : > { %1317 = vmatprep.subr.bf16.mxu1 %v1316_v35  ;;  %1323 = vmatpush3.bf16.msra.mxu0 %v1320_v38  ;;  %v1348_v15 = vpack.c.bf16 %v652_v14, %v651_v13 }
  0xfb   : > { %1325 = vmatprep.subr.bf16.mxu0 %v1324_v40 }
  0xfc   : > { %730 = vmatmul.mubr.f32.gmra.mrb[2].mxu0 %v581_v17 }
  0xfd   : > { %734 = vmatprep.mubr.f32.mxu0 %v584_v19  ;;  %1319 = vmatpush3.bf16.msra.mxu1 %v1316_v35 }
  0xfe   : > { %1352 = vmatprep.subr.bf16.mxu1 %v1320_v38  ;;  %1327 = vmatpush3.bf16.msra.mxu0 %v1324_v40 }
  0xff   : > { %1329 = vmatprep.subr.bf16.mxu0 %v1328_v43 }
 0x100   : > { %735 = vmatmul.mubr.f32.gmra.mrb[4].mxu0 %v583_v22 }
 0x101   : > { %739 = vmatprep.mubr.f32.mxu0 %v586_v24 }
 0x102   : > { %1331 = vmatpush3.bf16.msra.mxu0 %v1328_v43 }
 0x103   : > { %1333 = vmatprep.subr.bf16.mxu0 %v1332_v46 }
 0x104   : > { %740 = vmatmul.mubr.f32.gmra.mrb[6].mxu0 %v585_v27 }
 0x106   : > { %1335 = vmatpush3.bf16.msra.mxu0 %v1332_v46 }
 0x107   : > { %1337 = vmatprep.subr.bf16.mxu0 %v1336_v49 }
 0x10a   : > { %1339 = vmatpush3.bf16.msra.mxu0 %v1336_v49 }
 0x10b   : > { %1341 = vmatprep.subr.bf16.mxu0 %v1340_v52 }
 0x10e   : > { %1343 = vmatpush3.bf16.msra.mxu0 %v1340_v52 }
 0x10f   : > { %1345 = vmatprep.subr.bf16.mxu0 %v1344_v55 }
 0x112   : > { %1347 = vmatpush3.bf16.msra.mxu0 %v1344_v55 }
 0x113   : > { %1349 = vmatprep.subr.bf16.mxu0 %v1348_v15 }
 0x116   : > { %1351 = vmatpush3.bf16.msra.mxu0 %v1348_v15 }
 0x1cb   : > { %v1128_v56 = vpop.f32.mrb[0].mxu0 }
 0x1cc   : > { %v1129_v57 = vpop.f32.mrb[1].mxu0 }
 0x1cd   : > { %v1130_v59 = vadd.f32 %v1129_v57, %v1128_v56 }
 0x1cf   : > { %v1131_v60 = vpop.f32.mrb[2].mxu0  ;;  %v727_v61 = vadd.f32 %v1130_v59, %v1086_v58 }
 0x1d0   : > { %v1132_v62 = vpop.f32.mrb[3].mxu0 }
 0x1d1   : > { %v1133_v63 = vadd.f32 %v1132_v62, %v1131_v60  ;;  %v745_v0 = vmax.f32 %v727_v61, 0.0 }
 0x1d3   : > { %v732_v1 = vadd.f32 %v1133_v63, %v1086_v58  ;;  %v1134_v2 = vpop.f32.mrb[4].mxu0  ;;  %1212 = vmatprep.mubr.f32.mxu1 %v745_v0 }
 0x1d4   : > { %v1135_v3 = vpop.f32.mrb[5].mxu0 }
 0x1d5   : > { %v746_v4 = vmax.f32 %v732_v1, 0.0  ;;  %v1136_v5 = vadd.f32 %v1135_v3, %v1134_v2 }
 0x1d7   : > { %v737_v6 = vadd.f32 %v1136_v5, %v1086_v58  ;;  %v1137_v7 = vpop.f32.mrb[6].mxu0  ;;  %1213 = vmatmul.mubr.f32.vlgmr.msra.gmra.mrb[0].mxu1 %v746_v4 }
 0x1d8   : > { %v1138_v8 = vpop.f32.mrb[7].mxu0  ;;  %1360 = vmatpush3.bf16.msra.mxu1 %v1320_v38 }
 0x1d9   : > { %v747_v9 = vmax.f32 %v737_v6, 0.0  ;;  %v1139_v10 = vadd.f32 %v1138_v8, %v1137_v7  ;;  %1353 = vmatprep.subr.bf16.mxu1 %v1324_v40 }
 0x1db   : > { %v742_v11 = vadd.f32 %v1139_v10, %v1086_v58  ;;  %1215 = vmatprep.mubr.f32.mxu1 %v747_v9 }
 0x1dc   : > { %1361 = vmatpush3.bf16.msra.mxu1 %v1324_v40 }
 0x1dd   : > { %v748_v12 = vmax.f32 %v742_v11, 0.0  ;;  %1354 = vmatprep.subr.bf16.mxu1 %v1328_v43 }
 0x1df   : > { %1216 = vmatmul.mubr.f32.gmra.mrb[2].mxu1 %v748_v12 }
 0x1e0   : > { %1362 = vmatpush3.bf16.msra.mxu1 %v1328_v43 }
 0x1e1   : > { %1355 = vmatprep.subr.bf16.mxu1 %v1332_v46 }
 0x1e4   : > { %1363 = vmatpush3.bf16.msra.mxu1 %v1332_v46 }
 0x1e5   : > { %1356 = vmatprep.subr.bf16.mxu1 %v1336_v49 }
 0x1e8   : > { %1364 = vmatpush3.bf16.msra.mxu1 %v1336_v49 }
 0x1e9   : > { %1357 = vmatprep.subr.bf16.mxu1 %v1340_v52 }
 0x1ec   : > { %1365 = vmatpush3.bf16.msra.mxu1 %v1340_v52 }
 0x1ed   : > { %1358 = vmatprep.subr.bf16.mxu1 %v1344_v55 }
 0x1f0   : > { %1366 = vmatpush3.bf16.msra.mxu1 %v1344_v55 }
 0x1f1   : > { %1359 = vmatprep.subr.bf16.mxu1 %v1348_v15 }
 0x1f4   : > { %1367 = vmatpush3.bf16.msra.mxu1 %v1348_v15 }
 0x2aa   : > { %v1214_v17 = vpop.f32.mrb[0].mxu1 }
 0x2ab   : > { %v827_v18 = vadd.f32 %v1214_v17, %v1087_v16  ;;  %v821_v19 = vpop.f32.mrb[1].mxu1 }
 0x2ac   : > { %v822_v20 = vadd.f32 %v1087_v16, %v821_v19 }
 0x2ad   : > { %v841_v22 = vmax.f32 %v827_v18, 0.0 }
 0x2ae   : > { %v840_v21 = vmax.f32 %v822_v20, 0.0 }
 0x2b0   : > { %1250 = vmatprep.mubr.f32.mxu0 %v840_v21 }
 0x2b1   : > { %1251 = vmatmul.mubr.f32.vlgmr.msra.gmra.mrb[8].mxu0 %v841_v22 }
 0x2b2   : > { %v1217_v23 = vpop.f32.mrb[2].mxu1 }
 0x2b3   : > { %v837_v24 = vadd.f32 %v1217_v23, %v1087_v16  ;;  %v831_v27 = vpop.f32.mrb[3].mxu1 }
 0x2b4   : > { %v832_v28 = vadd.f32 %v1087_v16, %v831_v27 }
 0x2b5   : > { %v843_v30 = vmax.f32 %v837_v24, 0.0 }
 0x2b6   : > { %v842_v29 = vmax.f32 %v832_v28, 0.0 }
 0x2b8   : > { %1253 = vmatprep.mubr.f32.mxu1 %v842_v29 }
 0x2b9   : > { %1254 = vmatmul.mubr.f32.vlgmr.msra.gmra.mrb[4].mxu1 %v843_v30 }
 0x384   : > { %v1252_v32 = vpop.f32.mrb[8].mxu0 }
 0x385   : > { %v916_v25 = vpop.f32.mrb[9].mxu0  ;;  %v922_v34 = vadd.f32 %v1252_v32, %v1088_v31 }
 0x386   : > { %v917_v33 = vadd.f32 %v1088_v31, %v916_v25 }
 0x387   : > { %v936_v36 = vmul.f32 %v922_v34, %v922_v34 }
 0x388   : > { %v935_v35 = vmul.f32 %v917_v33, %v917_v33 }
 0x38a   : > { %939 = vadd.xlane.f32.xlu0 %v935_v35 }
 0x38c   : > { %v1255_v26 = vpop.f32.mrb[4].mxu1 }
 0x38d   : > { %v926_v37 = vpop.f32.mrb[5].mxu1  ;;  %v932_v39 = vadd.f32 %v1255_v26, %v1088_v31 }
 0x38e   : > { %v927_v38 = vadd.f32 %v1088_v31, %v926_v37  ;;  %941 = vadd.xlane.f32.xlu0 %v936_v36 }
 0x38f   : > { %v938_v41 = vmul.f32 %v932_v39, %v932_v39 }
 0x390   : > { %v937_v40 = vmul.f32 %v927_v38, %v927_v38 }
 0x392   : > { %943 = vadd.xlane.f32.xlu1 %v937_v40 }
 0x396   : > { %945 = vadd.xlane.f32.xlu1 %v938_v41 }
 0x417   : > { %v940_v42 = vpop.xlane.xlu0 %939 }
 0x418   : > { %v947_v43 = vmax.f32 %v940_v42, 1e-24 }
 0x41a   : > { %1459 = vrsqrt.f32 %v947_v43 }
 0x41b   : > { %v942_v44 = vpop.xlane.xlu0 %941 }
 0x41c   : > { %v948_v45 = vmax.f32 %v942_v44, 1e-24 }
 0x41e   : > { %1461 = vrsqrt.f32 %v948_v45 }
 0x41f   : > { %v944_v46 = vpop.xlane.xlu1 %943 }
 0x420   : > { %v949_v47 = vmax.f32 %v944_v46, 1e-24 }
 0x422   : > { %1463 = vrsqrt.f32 %v949_v47 }
 0x423   : > { %v946_v48 = vpop.xlane.xlu1 %945 }
 0x424   : > { %v1460_v49 = vpop.eup %1459  ;;  %v950_v50 = vmax.f32 %v946_v48, 1e-24 }
 0x425   : > { %v955_v51 = vmul.f32 %v1460_v49, %v917_v33 }
 0x426   : > { %1465 = vrsqrt.f32 %v950_v50 }
 0x427   : > { %959 = vst [vmem:[%s1897_s17] sm:$0xff] %v955_v51 }
 0x428   : > { %v1462_v52 = vpop.eup %1461 }
 0x429   : > { %v956_v53 = vmul.f32 %v1462_v52, %v922_v34 }
 0x42b   : > { %960 = vst [vmem:[%s1897_s17 + $0x8] sm:$0xff] %v956_v53 }
 0x42c   : > { %v1464_v54 = vpop.eup %1463 }
 0x42d   : > { %v957_v55 = vmul.f32 %v1464_v54, %v927_v38 }
 0x42f   : > { %961 = vst [vmem:[%s1897_s17 + $0x10] sm:$0xff] %v957_v55 }
 0x430   : > { %v1466_v56 = vpop.eup %1465 }
 0x431   : > { %v958_v57 = vmul.f32 %v1466_v56, %v932_v39 }
 0x433   : > { %962 = vst [vmem:[%s1897_s17 + $0x18] sm:$0xff] %v958_v57 }
 0x434   : > { %1592 = shalt.err (!%p1589_p1)
}
 0x435   : > { %s1593_s21 = scalar_lea.hbm %s1951_s28, 512  ;;  %s1597_s18 = scalar_lea.hbm %s2008_s9, 1024 }
 0x436   : > { %p1594_p6 = scmp.ne.s32.totalorder %s1951_s28, %s1593_s21  ;;  %p1598_p11 = scmp.lt.u32.totalorder %s1951_s28, %s2008_s9 }
 0x437   : > { %p1599_p13 = scmp.lt.u32.totalorder %s1597_s18, %s1593_s21  ;;  %p1601_p2 = scmp.lt.u32.totalorder %s1593_s21, %s1951_s28 }
 0x438   : > { %p1595_p9 = pnand %p1594_p6, %p2041_p3 }
 0x439   : > { %p1600_p0 = por %p1599_p13, %p1598_p11 }
 0x43a   : > { %p1596_p10 = pneg %p1595_p9 }
 0x43b   : > { %p1602_p4 = por %p1601_p2, %p1600_p0 }
 0x43d   : > { %p1603_p7 = pnand %p1602_p4, %p1596_p10 }
 0x43f   : > { %1606 = shalt.err (!%p1603_p7)
}
 0x440   : > { %s1665_s11 = smov 128   ;;  %s1666_s15 = smov 8  }
 0x441   : > { %1384 = dma.vmem_to_hbm [thread:$0]  (%p2041_p3), %s1953_s25, 512, %s1951_s28, %s1958_s20, %s1665_s11, %s1665_s11, %s1666_s15  }
 0x442 PF: > { %s2042_s24 = sld [smem:[#allocation20_spill]]  ;;  %p1411_p8 = scmp.ge.s32.totalorder %s1653_s12, 2 }
 0x443   : > { %s992_s3 = sand.u32 1, %s1641_s30  }
 0x444   : > { %s993_s14 = scalar_lea.sflag [#allocation6], %s992_s3 }
 0x448   : > { %p2043_p12 = scmp.ne.s32.totalorder %s2042_s24, 0 }
 0x44a   : > { %p1400_p5 = pnand %p1411_p8, %p2043_p12 }
 0x44c   : > { %1636 = dma.done.wait (!%p1400_p5), %s993_s14, 512  }
 0x44d   : > { %1638 = vsyncadd (!%p1400_p5), %s993_s14, 4294966784  ;;  %s2044_s12 = sld [smem:[#allocation18_spill]]  ;;  %s2045_s29 = sld [smem:[#allocation17_spill]] }
 0x44e   : > { %s2046_s11 = sld [smem:[#allocation19_spill]]  ;;  %s2047_s30 = smov %s1645_s10 }
 0x453   : > { %p22_p1 = scmp.ge.s32.totalorder %s2044_s12, 4   ;;  %s2048_s10 = smov %s2045_s29 }
 0x455   :  { %24 = sbr.rel (!%p22_p1) target bundleno = 8 (0x8), region = 110 }
 0x45c   :  { %998 = vsyncpa [#allocation5], 1 }
 0x45d   :  { %1000 = vsyncpa [#allocation5 + $0x1], 1 }
 0x45e   :  { %1001 = vsyncpa [#allocation8], 1 }
 0x45f   :  { %1002 = vsyncpa [#allocation11], 1 }
 0x460   :  { %1003 = vsyncpa [#allocation6], 1 }
 0x461   :  { %1005 = vsyncpa [#allocation6 + $0x1], 1 }

</bundles_post_ra>
